<compile_context>
chip_gen: v5e
topology: v5e:2x2
jax: 0.10.0
libtpu: 0.0.40
codegen_flags: <defaults>
</compile_context>

<pallas_src>
import functools
import math

import jax
import jax.numpy as jnp
from jax.experimental import pallas as pl
from jax.experimental.pallas import tpu as pltpu


# ----------------------------------------------------------------------------
# Per-generation limits
# ----------------------------------------------------------------------------
def _tpu_limits():
    vmem_cap = 64 * 1024 * 1024
    try:
        vmem_cap = int(pltpu.get_tpu_info().vmem_capacity_bytes)
    except Exception:
        pass
    if vmem_cap >= 100 * 1024 * 1024:
        # v5e / v6e: 128 MiB physical VMEM -> big tiles, raised scoped limit.
        return {"vmem_limit": 96 << 20, "tile_bytes": 14 << 20,
                "fast_bytes": 16 << 20}
    # v7x (64 MiB physical) or unknown: conservative tiles.
    return {"vmem_limit": 40 << 20, "tile_bytes": 7 << 20,
            "fast_bytes": 6 << 20}


def _round_up(a, b):
    return (a + b - 1) // b * b


def _pick_lane_fold(N, CT):
    """Pick k (rows folded into lanes) so k*CT % 128 == 0 and ideally >= 512 lanes.
    Folding is only done when it is a free reshape (N % k == 0)."""
    if N <= 1:
        return 1
    base = 128 // math.gcd(CT, 128)        # smallest k making k*CT lane-aligned
    best = 1 if CT % 128 == 0 else 0       # 0 = no aligned fold found yet
    k = base
    limit = min(N, 4096)                   # bounded trace-time scan
    while k <= limit:
        if N % k == 0 and (N // k >= 8 or best == 0):
            best = k
            if k * CT >= 512:
                break
        k += base
    return max(best, 1)


# ----------------------------------------------------------------------------
# Kernels
# ----------------------------------------------------------------------------
def _fused_kernel(x_ref, gamma_ref, beta_ref, o_ref, *, inv_count, eps):
    """Small-input fast path: whole (N, C, T) array resident; centered variance."""
    x = x_ref[...].astype(jnp.float32)                          # (N, C, T)
    s = jnp.sum(jnp.sum(x, axis=2, keepdims=True), axis=0, keepdims=True)
    mean = s * inv_count                                        # (1, C, 1)
    xc = x - mean
    sq = jnp.sum(jnp.sum(xc * xc, axis=2, keepdims=True), axis=0, keepdims=True)
    var = sq * inv_count                                        # (1, C, 1) biased
    scale = gamma_ref[...] * jax.lax.rsqrt(var + eps)           # (1, C, 1)
    o_ref[...] = (xc * scale + beta_ref[...]).astype(o_ref.dtype)


def _stats_kernel(x_ref, sum_ref, sq_ref):
    """Per-lane sum / sum-of-squares, accumulated in f32 into a per-core row."""
    @pl.when(pl.program_id(1) == 0)
    def _init():
        sum_ref[...] = jnp.zeros_like(sum_ref)
        sq_ref[...] = jnp.zeros_like(sq_ref)

    x = x_ref[...].astype(jnp.float32)                          # (tn, L)
    sum_ref[...] += jnp.sum(x, axis=0, keepdims=True)[None]     # (1, 1, L)
    sq_ref[...] += jnp.sum(x * x, axis=0, keepdims=True)[None]


def _normalize_kernel(x_ref, scale_ref, shift_ref, o_ref):
    """y = x * scale + shift, with (1, L) scale/shift rows resident."""
    x = x_ref[...].astype(jnp.float32)
    o_ref[...] = (x * scale_ref[...] + shift_ref[...]).astype(o_ref.dtype)


# ----------------------------------------------------------------------------
# Paths
# ----------------------------------------------------------------------------
def _fast_path(x, gamma, beta, eps, vmem_limit):
    B, S, C, T = x.shape
    N = B * S
    x3 = x.reshape(N, C, T)                                     # free view
    g3 = gamma.astype(jnp.float32).reshape(1, C, 1)
    b3 = beta.astype(jnp.float32).reshape(1, C, 1)
    vmem = pl.BlockSpec(memory_space=pltpu.MemorySpace.VMEM)
    y3 = pl.pallas_call(
        functools.partial(_fused_kernel, inv_count=1.0 / float(N * T), eps=eps),
        out_shape=jax.ShapeDtypeStruct((N, C, T), x.dtype),
        in_specs=[vmem, vmem, vmem],
        out_specs=vmem,
        compiler_params=pltpu.CompilerParams(vmem_limit_bytes=vmem_limit),
    )(x3, g3, b3)
    return y3.reshape(B, S, C, T)


def _tiled_path(x, gamma, beta, eps, vmem_limit, tile_bytes):
    B, S, C, T = x.shape
    N, CT = B * S, C * T
    itemsize = jnp.dtype(x.dtype).itemsize
    sub = max(8, 32 // itemsize)            # sublane requirement: f32 8, bf16 16, i8 32

    # ---- Lane folding: (N, CT) viewed as (R, L), L = k*CT a multiple of 128 ----
    k = _pick_lane_fold(N, CT)
    R, L = N // k, k * CT
    x2d = x.reshape(R, L)                   # contiguous -> free view

    # ---- Row tiling (shared by both passes); zero-pad awkward row counts ----
    row_bytes = L * itemsize
    cap = max(sub, (tile_bytes // max(row_bytes, 1)) // sub * sub)
    tn = min(cap, _round_up(R, sub))
    Rp = _round_up(R, tn)
    n_blk = Rp // tn
    ncore = 2 if n_blk % 2 == 0 else 1      # megacore split for the stats pass
    steps = n_blk // ncore

    if Rp != R:
        # Zero rows contribute 0 to sum/sum-of-squares; output rows are sliced off.
        x2d = jnp.pad(x2d, ((0, Rp - R), (0, 0)))

    # ---- Pass 1: per-lane sum / sum-of-squares, one accumulator row per core ----
    acc_sum, acc_sq = pl.pallas_call(
        _stats_kernel,
        grid=(ncore, steps),
        in_specs=[pl.BlockSpec((tn, L), lambda c, i, s=steps: (c * s + i, 0))],
        out_specs=(pl.BlockSpec((1, 1, L), lambda c, i: (c, 0, 0)),
                   pl.BlockSpec((1, 1, L), lambda c, i: (c, 0, 0))),
        out_shape=(jax.ShapeDtypeStruct((ncore, 1, L), jnp.float32),
                   jax.ShapeDtypeStruct((ncore, 1, L), jnp.float32)),
        compiler_params=pltpu.CompilerParams(
            dimension_semantics=("parallel", "arbitrary"),
            vmem_limit_bytes=vmem_limit),
        cost_estimate=pl.CostEstimate(flops=3 * Rp * L, transcendentals=0,
                                      bytes_accessed=Rp * L * itemsize),
    )(x2d)

    # ---- Tiny O(k*C*T) glue: fold lanes -> channels, precompute scale/shift ----
    count = float(N * T)
    col_sum = jnp.sum(acc_sum, axis=0).reshape(L)
    col_sq = jnp.sum(acc_sq, axis=0).reshape(L)
    ch_sum = col_sum.reshape(k, C, T).sum(axis=(0, 2))
    ch_sq = col_sq.reshape(k, C, T).sum(axis=(0, 2))
    mean = ch_sum / count
    var = jnp.maximum(ch_sq / count - mean * mean, 0.0)         # biased variance
    inv = jax.lax.rsqrt(var + eps)
    scale_c = gamma.astype(jnp.float32) * inv                   # (C,)
    shift_c = beta.astype(jnp.float32) - mean * scale_c         # (C,)
    scale_row = jnp.tile(jnp.repeat(scale_c, T), k).reshape(1, L)
    shift_row = jnp.tile(jnp.repeat(shift_c, T), k).reshape(1, L)

    # ---- Pass 2: fused multiply-add normalize, parallel across row tiles ----
    y2d = pl.pallas_call(
        _normalize_kernel,
        grid=(n_blk,),
        in_specs=[pl.BlockSpec((tn, L), lambda i: (i, 0)),
                  pl.BlockSpec((1, L), lambda i: (0, 0)),
                  pl.BlockSpec((1, L), lambda i: (0, 0))],
        out_specs=pl.BlockSpec((tn, L), lambda i: (i, 0)),
        out_shape=jax.ShapeDtypeStruct((Rp, L), x.dtype),
        compiler_params=pltpu.CompilerParams(
            dimension_semantics=("parallel",),
            vmem_limit_bytes=vmem_limit),
        cost_estimate=pl.CostEstimate(flops=2 * Rp * L, transcendentals=0,
                                      bytes_accessed=2 * Rp * L * itemsize),
    )(x2d, scale_row, shift_row)

    if Rp != R:
        y2d = y2d[:R]
    return y2d.reshape(B, S, C, T)


# ----------------------------------------------------------------------------
# Public wrapper
# ----------------------------------------------------------------------------
def custom_batchnorm1d(x, gamma, beta, eps=1e-5, force_path=None,
                       tile_bytes_override=None):
    """x: (B, S, C, T); gamma, beta: (C,). Training-mode BatchNorm1d forward."""
    B, S, C, T = x.shape
    N, CT = B * S, C * T
    limits = _tpu_limits()
    vmem_limit = limits["vmem_limit"]
    tile_bytes = tile_bytes_override if tile_bytes_override else limits["tile_bytes"]

    use_fast = (N * CT * 4) <= limits["fast_bytes"]   # f32 working-set size
    if force_path == "fast":
        use_fast = True
    elif force_path == "tiled":
        use_fast = False

    if use_fast:
        return _fast_path(x, gamma, beta, eps, vmem_limit)
    return _tiled_path(x, gamma, beta, eps, vmem_limit, tile_bytes)


# ----------------------------------------------------------------------------
# Reference + test
# ----------------------------------------------------------------------------
def _reference(x, gamma, beta, eps=1e-5):
    B, S, C, T = x.shape
    xr = x.reshape(B * S, C, T)
    mean = xr.mean(axis=(0, 2), keepdims=True)
    var = ((xr - mean) ** 2).mean(axis=(0, 2), keepdims=True)
    y = (xr - mean) / jnp.sqrt(var + eps)
    y = y * gamma.reshape(1, C, 1) + beta.reshape(1, C, 1)
    return y.reshape(B, S, C, T)


if __name__ == "__main__":
    key = jax.random.PRNGKey(0)
    kx, kg, kb = jax.random.split(key, 3)

    # Main (graded) run: small shape -> fused fast path.
    B, S, C, T = 2, 4, 16, 16          # batch, num_signals, channels, time
    x = jax.random.normal(kx, (B, S, C, T), dtype=jnp.float32)
    gamma = 1.0 + 0.1 * jax.random.normal(kg, (C,), dtype=jnp.float32)
    beta = 0.1 * jax.random.normal(kb, (C,), dtype=jnp.float32)

    fn = jax.jit(custom_batchnorm1d)
    out = jax.block_until_ready(fn(x, gamma, beta))
    ref = _reference(x, gamma, beta)
    assert out.shape == (B, S, C, T)
    assert jnp.allclose(out, ref, atol=1e-5, rtol=1e-5), "fast-path mismatch"

    # Also exercise the tiled two-pass path (lane folding, megacore stats split,
    # row padding) on an awkward shape with a tiny tile budget.
    B2, S2, C2, T2 = 3, 11, 16, 16      # N = 33 rows (needs padding), k = 3 fold
    x2 = jax.random.normal(kx, (B2, S2, C2, T2), dtype=jnp.float32)
    g2 = 1.0 + 0.1 * jax.random.normal(kg, (C2,), dtype=jnp.float32)
    b2 = 0.1 * jax.random.normal(kb, (C2,), dtype=jnp.float32)
    fn2 = jax.jit(functools.partial(custom_batchnorm1d, force_path="tiled",
                                    tile_bytes_override=8192))
    out2 = jax.block_until_ready(fn2(x2, g2, b2))
    ref2 = _reference(x2, g2, b2)
    assert out2.shape == (B2, S2, C2, T2)
    assert jnp.allclose(out2, ref2, atol=1e-5, rtol=1e-5), "tiled-path mismatch"

    print("KERNEL_OK")
</pallas_src>

<mosaic_0001>
module attributes {stable_mosaic.version = 11 : i64} {
  func.func @_fused_kernel(%arg0: memref<8x16x16xf32, #tpu.memory_space<vmem>>, %arg1: memref<1x16x1xf32, #tpu.memory_space<vmem>>, %arg2: memref<1x16x1xf32, #tpu.memory_space<vmem>>, %arg3: memref<8x16x16xf32, #tpu.memory_space<vmem>>) attributes {dimension_semantics = [], scalar_prefetch = 0 : i64, scratch_operands = 0 : i64, tpu.core_type = #tpu.core_type<tc>} {
    %c0 = arith.constant 0 : index
    %c0_0 = arith.constant 0 : index
    %c0_1 = arith.constant 0 : index
    %0 = vector.load %arg0[%c0, %c0_0, %c0_1] : memref<8x16x16xf32, #tpu.memory_space<vmem>>, vector<8x16x16xf32>
    %cst = arith.constant dense<0.000000e+00> : vector<8x16xf32>
    %1 = vector.multi_reduction <add>, %0, %cst [2] : vector<8x16x16xf32> to vector<8x16xf32>
    %2 = vector.shape_cast %1 : vector<8x16xf32> to vector<8x16x1xf32>
    %cst_2 = arith.constant dense<0.000000e+00> : vector<16x1xf32>
    %3 = vector.multi_reduction <add>, %2, %cst_2 [0] : vector<8x16x1xf32> to vector<16x1xf32>
    %4 = vector.shape_cast %3 : vector<16x1xf32> to vector<1x16x1xf32>
    %cst_3 = arith.constant 7.812500e-03 : f32
    %5 = vector.broadcast %cst_3 : f32 to vector<1x16x1xf32>
    %6 = arith.mulf %4, %5 : vector<1x16x1xf32>
    %7 = vector.broadcast %6 : vector<1x16x1xf32> to vector<8x16x16xf32>
    %8 = arith.subf %0, %7 : vector<8x16x16xf32>
    %9 = arith.mulf %8, %8 : vector<8x16x16xf32>
    %cst_4 = arith.constant dense<0.000000e+00> : vector<8x16xf32>
    %10 = vector.multi_reduction <add>, %9, %cst_4 [2] : vector<8x16x16xf32> to vector<8x16xf32>
    %11 = vector.shape_cast %10 : vector<8x16xf32> to vector<8x16x1xf32>
    %cst_5 = arith.constant dense<0.000000e+00> : vector<16x1xf32>
    %12 = vector.multi_reduction <add>, %11, %cst_5 [0] : vector<8x16x1xf32> to vector<16x1xf32>
    %13 = vector.shape_cast %12 : vector<16x1xf32> to vector<1x16x1xf32>
    %cst_6 = arith.constant 7.812500e-03 : f32
    %14 = vector.broadcast %cst_6 : f32 to vector<1x16x1xf32>
    %15 = arith.mulf %13, %14 : vector<1x16x1xf32>
    %c0_7 = arith.constant 0 : index
    %c0_8 = arith.constant 0 : index
    %c0_9 = arith.constant 0 : index
    %16 = vector.load %arg1[%c0_7, %c0_8, %c0_9] : memref<1x16x1xf32, #tpu.memory_space<vmem>>, vector<1x16x1xf32>
    %cst_10 = arith.constant 9.99999974E-6 : f32
    %17 = vector.broadcast %cst_10 : f32 to vector<1x16x1xf32>
    %18 = arith.addf %15, %17 : vector<1x16x1xf32>
    %19 = math.rsqrt %18 : vector<1x16x1xf32>
    %20 = arith.mulf %16, %19 : vector<1x16x1xf32>
    %21 = vector.broadcast %20 : vector<1x16x1xf32> to vector<8x16x16xf32>
    %22 = arith.mulf %8, %21 : vector<8x16x16xf32>
    %c0_11 = arith.constant 0 : index
    %c0_12 = arith.constant 0 : index
    %c0_13 = arith.constant 0 : index
    %23 = vector.load %arg2[%c0_11, %c0_12, %c0_13] : memref<1x16x1xf32, #tpu.memory_space<vmem>>, vector<1x16x1xf32>
    %24 = vector.broadcast %23 : vector<1x16x1xf32> to vector<8x16x16xf32>
    %25 = arith.addf %22, %24 : vector<8x16x16xf32>
    %c0_14 = arith.constant 0 : index
    %c0_15 = arith.constant 0 : index
    %c0_16 = arith.constant 0 : index
    %26 = vector.load %arg3[%c0_14, %c0_15, %c0_16] : memref<8x16x16xf32, #tpu.memory_space<vmem>>, vector<8x16x16xf32>
    tpu.vector_store %arg3[%c0_14, %c0_15, %c0_16], %25 {strides = array<i32>} : memref<8x16x16xf32, #tpu.memory_space<vmem>>, vector<8x16x16xf32>,
    return
  }
}

</mosaic_0001>

<bundles_post_ra>
// kernel: custom_batchnorm1d.1
= control target key start
LH: loop header
LB: loop body
LE: loop exit
PB: predicated region body
PF: predicated region fallthrough
CT: control target
= control target key end

     0   :  { %8 = vsyncpa [#allocation3], 0  ;;  %s628_s0 = inlined_call_operand.hbm [shape: f32[8,16,16], index: 0, kind: input, shape index: {}]   ;;  %s629_s1 = inlined_call_operand.vmem [shape: f32[1,16,1], index: 1, kind: input, shape index: {}]   ;;  %s630_s2 = inlined_call_operand.vmem [shape: f32[1,16,1], index: 2, kind: input, shape index: {}]   ;;  %s631_s3 = inlined_call_operand.hbm [shape: f32[8,16,16], index: 3, kind: output, shape index: {}]  }
   0x1   :  { %9 = vsyncpa [#allocation4], 0  ;;  %s14_s14 = sshll.u32 %s628_s0, 4  ;;  %s387_s15 = smov [#allocation2]   ;;  %s15_s14 = int_to_ptr.hbm [resolvable:$true] %s14_s14 }
   0x2   :  { %s16_s16 = sshll.u32 %s387_s15, 4  ;;  %s388_s17 = smov 128   ;;  %s17_s16 = int_to_ptr.vmem [resolvable:$true] %s16_s16 }
   0x3   :  { %s389_s18 = smov 8  }
   0x4   :  { %22 = dma.hbm_to_vmem [thread:$0]  %s15_s14, 2048, %s17_s16, [#allocation3], %s388_s17, %s388_s17, %s389_s18  }
   0x5   :  { %383 = dma.done.wait [#allocation3], 2048  }
   0x6   :  { %384 = vsyncadd [#allocation3], 4294965248  ;;  %vm47_vm0 = vcmask 130048   ;;  %v418_v0 = vld [vmem:[#allocation2 + $0x10] sm:$0xff]  ;;  %v420_v1 = vld [vmem:[#allocation2] sm:$0xff]  ;;  %s310_s28 = sshll.u32 %s631_s3, 4  ;;  %s311_s28 = int_to_ptr.hbm [resolvable:$true] %s310_s28 }
   0x7   :  { %v422_v2 = vld [vmem:[#allocation2 + $0x20] sm:$0xff]  ;;  %v54_v3 = vsel %vm47_vm0, %v418_v0, 0.0  ;;  %v48_v4 = vsel %vm47_vm0, %v420_v1, 0.0  ;;  %v430_v6 = vld [vmem:[#allocation2 + $0x18] sm:$0xff]  ;;  %v432_v7 = vld [vmem:[#allocation2 + $0x8] sm:$0xff] }
   0x8   :  { %v60_v5 = vsel %vm47_vm0, %v422_v2, 0.0  ;;  %55 = vadd.xlane.f32.xlu1 %v54_v3  ;;  %49 = vadd.xlane.f32.xlu0 %v48_v4  ;;  %v434_v8 = vld [vmem:[#allocation2 + $0x28] sm:$0xff]  ;;  %v57_v9 = vsel %vm47_vm0, %v430_v6, 0.0  ;;  %v51_v10 = vsel %vm47_vm0, %v432_v7, 0.0  ;;  %v442_v12 = vld [vmem:[#allocation2 + $0x38] sm:$0xff]  ;;  %v444_v13 = vld [vmem:[#allocation2 + $0x30] sm:$0xff] }
   0x9   :  { %61 = vadd.xlane.f32.xlu2 %v60_v5  ;;  %v63_v11 = vsel %vm47_vm0, %v434_v8, 0.0  ;;  %v446_v14 = vld [vmem:[#allocation2 + $0x40] sm:$0xff]  ;;  %v69_v15 = vsel %vm47_vm0, %v442_v12, 0.0  ;;  %v66_v16 = vsel %vm47_vm0, %v444_v13, 0.0  ;;  %v454_v18 = vld [vmem:[#allocation2 + $0x50] sm:$0xff]  ;;  %v456_v19 = vld [vmem:[#allocation2 + $0x48] sm:$0xff] }
   0xa   :  { %v72_v17 = vsel %vm47_vm0, %v446_v14, 0.0  ;;  %v458_v20 = vld [vmem:[#allocation2 + $0x58] sm:$0xff]  ;;  %v78_v21 = vsel %vm47_vm0, %v454_v18, 0.0  ;;  %v75_v22 = vsel %vm47_vm0, %v456_v19, 0.0  ;;  %v466_v24 = vld [vmem:[#allocation2 + $0x68] sm:$0xff]  ;;  %v468_v25 = vld [vmem:[#allocation2 + $0x60] sm:$0xff] }
   0xb   :  { %v81_v23 = vsel %vm47_vm0, %v458_v20, 0.0  ;;  %v470_v26 = vld [vmem:[#allocation2 + $0x70] sm:$0xff]  ;;  %v87_v27 = vsel %vm47_vm0, %v466_v24, 0.0  ;;  %v84_v28 = vsel %vm47_vm0, %v468_v25, 0.0  ;;  %v478_v30 = vld [vmem:[#allocation2 + $0x78] sm:$0xff] }
   0xc   :  { %v90_v29 = vsel %vm47_vm0, %v470_v26, 0.0  ;;  %v93_v31 = vsel %vm47_vm0, %v478_v30, 0.0 }
  0x10   :  { %58 = vadd.xlane.f32.xlu1 %v57_v9  ;;  %52 = vadd.xlane.f32.xlu0 %v51_v10 }
  0x11   :  { %64 = vadd.xlane.f32.xlu2 %v63_v11 }
  0x18   :  { %70 = vadd.xlane.f32.xlu1 %v69_v15  ;;  %67 = vadd.xlane.f32.xlu0 %v66_v16 }
  0x19   :  { %73 = vadd.xlane.f32.xlu2 %v72_v17 }
  0x20   :  { %79 = vadd.xlane.f32.xlu1 %v78_v21  ;;  %76 = vadd.xlane.f32.xlu0 %v75_v22 }
  0x21   :  { %82 = vadd.xlane.f32.xlu2 %v81_v23 }
  0x28   :  { %88 = vadd.xlane.f32.xlu1 %v87_v27  ;;  %85 = vadd.xlane.f32.xlu0 %v84_v28 }
  0x29   :  { %91 = vadd.xlane.f32.xlu2 %v90_v29 }
  0x30   :  { %94 = vadd.xlane.f32.xlu0 %v93_v31 }
  0x7b   :  { %v56_v32 = vpop.xlane.xlu1 %55  ;;  %v50_v33 = vpop.xlane.xlu0 %49 }
  0x7c   :  { %v62_v34 = vpop.xlane.xlu2 %61  ;;  %v96_v41 = vadd.f32 %v56_v32, %v50_v33 }
  0x7e   :  { %v97_v42 = vadd.f32 %v96_v41, %v62_v34 }
  0x83   :  { %v59_v35 = vpop.xlane.xlu1 %58  ;;  %v53_v36 = vpop.xlane.xlu0 %52 }
  0x84   :  { %v65_v37 = vpop.xlane.xlu2 %64  ;;  %v103_v44 = vadd.f32 %v59_v35, %v53_v36 }
  0x86   :  { %v104_v48 = vadd.f32 %v103_v44, %v65_v37 }
  0x8b   :  { %v71_v38 = vpop.xlane.xlu1 %70  ;;  %v68_v39 = vpop.xlane.xlu0 %67 }
  0x8c   :  { %v74_v40 = vpop.xlane.xlu2 %73  ;;  %v98_v45 = vadd.f32 %v97_v42, %v68_v39  ;;  %v105_v50 = vadd.f32 %v104_v48, %v71_v38 }
  0x8e   :  { %v99_v49 = vadd.f32 %v98_v45, %v74_v40 }
  0x93   :  { %v77_v43 = vpop.xlane.xlu0 %76  ;;  %v80_v47 = vpop.xlane.xlu1 %79 }
  0x94   :  { %v83_v46 = vpop.xlane.xlu2 %82  ;;  %v100_v51 = vadd.f32 %v99_v49, %v80_v47  ;;  %v106_v53 = vadd.f32 %v105_v50, %v77_v43 }
  0x96   :  { %v107_v58 = vadd.f32 %v106_v53, %v83_v46  ;;  %v390_v53 = vmov 0  }
  0x97   :  { %330 = vset.pattern.permute.xlu1 %v390_v53  ;;  %328 = vset.pattern.permute.xlu2 %v390_v53 }
  0x98   :  { %329 = vset.pattern.permute.xlu0 %v390_v53 }
  0x9b   :  { %v86_v52 = vpop.xlane.xlu0 %85  ;;  %v89_v57 = vpop.xlane.xlu1 %88 }
  0x9c   :  { %v101_v54 = vadd.f32 %v100_v51, %v86_v52  ;;  %v92_v55 = vpop.xlane.xlu2 %91  ;;  %v108_v60 = vadd.f32 %v107_v58, %v89_v57 }
  0x9e   :  { %v102_v56 = vadd.f32 %v101_v54, %v92_v55  ;;  %v260_v54 = vld [vmem:[%s630_s2] sm:$0xff] }
  0xa0   :  { %v110_v59 = vmul.f32 0.0078125, %v102_v56 }
  0xa2   :  { %v483_v61 = vsub.f32 %v418_v0, %v110_v59  ;;  %v486_v62 = vsub.f32 %v420_v1, %v110_v59  ;;  %v516_v23 = vsub.f32 %v446_v14, %v110_v59  ;;  %v519_v27 = vsub.f32 %v444_v13, %v110_v59 }
  0xa3   :  { %v95_v63 = vpop.xlane.xlu0 %94  ;;  %v547_v38 = vsub.f32 %v454_v18, %v110_v59  ;;  %v552_v39 = vsub.f32 %v470_v26, %v110_v59  ;;  %v555_v40 = vsub.f32 %v468_v25, %v110_v59 }
  0xa4   :  { %v109_v3 = vadd.f32 %v108_v60, %v95_v63  ;;  %v130_v4 = vmul.f32 %v483_v61, %v483_v61  ;;  %v128_v5 = vmul.f32 %v486_v62, %v486_v62  ;;  %v134_v29 = vmul.f32 %v519_v27, %v519_v27 }
  0xa5   :  { %v138_v41 = vmul.f32 %v547_v38, %v547_v38  ;;  %v142_v18 = vmul.f32 %v552_v39, %v552_v39  ;;  %v140_v42 = vmul.f32 %v555_v40, %v555_v40 }
  0xa6   :  { %v111_v9 = vmul.f32 0.0078125, %v109_v3  ;;  %v150_v10 = vsel %vm47_vm0, %v130_v4, 0.0  ;;  %v144_v11 = vsel %vm47_vm0, %v128_v5, 0.0  ;;  %v162_v14 = vsel %vm47_vm0, %v134_v29, 0.0 }
  0xa7   :  { %151 = vadd.xlane.f32.xlu0 %v150_v10  ;;  %145 = vadd.xlane.f32.xlu1 %v144_v11  ;;  %v174_v43 = vsel %vm47_vm0, %v138_v41, 0.0  ;;  %v186_v25 = vsel %vm47_vm0, %v142_v18, 0.0  ;;  %v180_v26 = vsel %vm47_vm0, %v140_v42, 0.0 }
  0xa8   :  { %v495_v0 = vsub.f32 %v432_v7, %v111_v9  ;;  %v498_v1 = vsub.f32 %v434_v8, %v111_v9  ;;  %v501_v15 = vsub.f32 %v430_v6, %v111_v9  ;;  %v511_v7 = vsub.f32 %v422_v2, %v110_v59 }
  0xa9   :  { %v136_v2 = vmul.f32 %v516_v23, %v516_v23  ;;  %v529_v32 = vsub.f32 %v442_v12, %v111_v9  ;;  %v534_v33 = vsub.f32 %v458_v20, %v111_v9  ;;  %v537_v34 = vsub.f32 %v456_v19, %v111_v9 }
  0xaa   :  { %v129_v16 = vmul.f32 %v495_v0, %v495_v0  ;;  %v133_v17 = vmul.f32 %v498_v1, %v498_v1  ;;  %v131_v21 = vmul.f32 %v501_v15, %v501_v15  ;;  %v132_v28 = vmul.f32 %v511_v7, %v511_v7 }
  0xab   :  { %v168_v13 = vsel %vm47_vm0, %v136_v2, 0.0  ;;  %v135_v35 = vmul.f32 %v529_v32, %v529_v32  ;;  %v139_v12 = vmul.f32 %v534_v33, %v534_v33  ;;  %v137_v36 = vmul.f32 %v537_v34, %v537_v34 }
  0xac   :  { %v147_v22 = vsel %vm47_vm0, %v129_v16, 0.0  ;;  %v159_v8 = vsel %vm47_vm0, %v133_v17, 0.0  ;;  %v153_v6 = vsel %vm47_vm0, %v131_v21, 0.0  ;;  %v156_v31 = vsel %vm47_vm0, %v132_v28, 0.0 }
  0xad   :  { %148 = vadd.xlane.f32.xlu2 %v147_v22  ;;  %v165_v37 = vsel %vm47_vm0, %v135_v35, 0.0  ;;  %v177_v19 = vsel %vm47_vm0, %v139_v12, 0.0  ;;  %v171_v20 = vsel %vm47_vm0, %v137_v36, 0.0  ;;  %v565_v44 = vsub.f32 %v466_v24, %v111_v9 }
  0xae   :  { %v570_v45 = vsub.f32 %v478_v30, %v111_v9 }
  0xaf   :  { %160 = vadd.xlane.f32.xlu0 %v159_v8  ;;  %154 = vadd.xlane.f32.xlu1 %v153_v6  ;;  %v141_v46 = vmul.f32 %v565_v44, %v565_v44 }
  0xb0   :  { %v143_v47 = vmul.f32 %v570_v45, %v570_v45 }
  0xb1   :  { %v183_v48 = vsel %vm47_vm0, %v141_v46, 0.0  ;;  %v208_v46 = vld [vmem:[%s629_s1] sm:$0xff] }
  0xb2   :  { %v189_v24 = vsel %vm47_vm0, %v143_v47, 0.0 }
  0xb5   :  { %157 = vadd.xlane.f32.xlu2 %v156_v31 }
  0xb7   :  { %169 = vadd.xlane.f32.xlu0 %v168_v13  ;;  %163 = vadd.xlane.f32.xlu1 %v162_v14 }
  0xbd   :  { %166 = vadd.xlane.f32.xlu2 %v165_v37 }
  0xbf   :  { %178 = vadd.xlane.f32.xlu0 %v177_v19  ;;  %172 = vadd.xlane.f32.xlu1 %v171_v20 }
  0xc5   :  { %175 = vadd.xlane.f32.xlu2 %v174_v43 }
  0xc7   :  { %187 = vadd.xlane.f32.xlu0 %v186_v25  ;;  %181 = vadd.xlane.f32.xlu1 %v180_v26 }
  0xcd   :  { %184 = vadd.xlane.f32.xlu2 %v183_v48 }
  0xcf   :  { %190 = vadd.xlane.f32.xlu1 %v189_v24 }
  0xe8   :  { %264 = vperm.xlu1 %330, %v260_v54   ;;  %v261_v54 = vld [vmem:[%s630_s2 + $0x8] sm:$0xff] }
 0x11a   :  { %v146_v49 = vpop.xlane.xlu1 %145  ;;  %v152_v50 = vpop.xlane.xlu0 %151 }
 0x11b   :  { %v192_v58 = vadd.f32 %v152_v50, %v146_v49 }
 0x120   :  { %v149_v51 = vpop.xlane.xlu2 %148 }
 0x122   :  { %v155_v52 = vpop.xlane.xlu1 %154  ;;  %v161_v30 = vpop.xlane.xlu0 %160 }
 0x123   :  { %v199_v63 = vadd.f32 %v155_v52, %v149_v51  ;;  %v209_v51 = vld [vmem:[%s629_s1 + $0x8] sm:$0xff]  ;;  %s391_s1 = smov [#allocation5]  }
 0x124   :  { %s308_s2 = sshll.u32 %s391_s1, 4  ;;  %s309_s2 = int_to_ptr.vmem [resolvable:$true] %s308_s2 }
 0x125   :  { %v200_v9 = vadd.f32 %v199_v63, %v161_v30 }
 0x128   :  { %v158_v55 = vpop.xlane.xlu2 %157 }
 0x129   :  { %v193_v59 = vadd.f32 %v192_v58, %v158_v55 }
 0x12a   :  { %v164_v56 = vpop.xlane.xlu1 %163  ;;  %v170_v57 = vpop.xlane.xlu0 %169 }
 0x12b   :  { %v194_v5 = vadd.f32 %v193_v59, %v164_v56 }
 0x12d   :  { %v195_v10 = vadd.f32 %v194_v5, %v170_v57 }
 0x130   :  { %v167_v60 = vpop.xlane.xlu2 %166 }
 0x131   :  { %v201_v11 = vadd.f32 %v200_v9, %v167_v60 }
 0x132   :  { %v173_v3 = vpop.xlane.xlu1 %172  ;;  %v179_v4 = vpop.xlane.xlu0 %178 }
 0x133   :  { %v202_v22 = vadd.f32 %v201_v11, %v173_v3 }
 0x135   :  { %v203_v2 = vadd.f32 %v202_v22, %v179_v4 }
 0x138   :  { %v176_v16 = vpop.xlane.xlu2 %175 }
 0x139   :  { %v196_v17 = vadd.f32 %v195_v10, %v176_v16 }
 0x13a   :  { %v182_v21 = vpop.xlane.xlu1 %181  ;;  %v188_v6 = vpop.xlane.xlu0 %187 }
 0x13b   :  { %v197_v8 = vadd.f32 %v196_v17, %v182_v21 }
 0x13d   :  { %v198_v28 = vadd.f32 %v197_v8, %v188_v6 }
 0x13f   :  { %v206_v29 = vmul.f32 0.0078125, %v198_v28 }
 0x140   :  { %v185_v31 = vpop.xlane.xlu2 %184 }
 0x141   :  { %v210_v13 = vadd.f32 1e-05, %v206_v29  ;;  %v204_v14 = vadd.f32 %v203_v2, %v185_v31 }
 0x142   :  { %v191_v35 = vpop.xlane.xlu1 %190 }
 0x143   :  { %331 = vrsqrt.f32 %v210_v13  ;;  %v205_v12 = vadd.f32 %v204_v14, %v191_v35  ;;  %vm218_vm2 = vweird.f32 %v210_v13 }
 0x145   :  { %v207_v36 = vmul.f32 0.0078125, %v205_v12 }
 0x147   :  { %v211_v37 = vadd.f32 1e-05, %v207_v36 }
 0x149   :  { %v332_v19 = vpop.eup %331  ;;  %333 = vrsqrt.f32 %v211_v37  ;;  %vm228_vm5 = vweird.f32 %v211_v37 }
 0x14a   :  { %v213_v20 = vmul.f32 %v332_v19, %v210_v13  ;;  %vm219_vm1 = vweird.f32 %v332_v19 }
 0x14b   :  { %vm220_vm3 = vmor %vm218_vm2, %vm219_vm1 }
 0x14c   :  { %v214_v41 = vmul.f32 %v332_v19, %v213_v20 }
 0x14e   :  { %v215_v18 = vmul.f32 0.5, %v214_v41 }
 0x14f   :  { %v334_v42 = vpop.eup %333 }
 0x150   :  { %v216_v43 = vsub.f32 1.5, %v215_v18  ;;  %v223_v25 = vmul.f32 %v334_v42, %v211_v37  ;;  %vm229_vm4 = vweird.f32 %v334_v42 }
 0x151   :  { %vm230_vm6 = vmor %vm228_vm5, %vm229_vm4 }
 0x152   :  { %v224_v26 = vmul.f32 %v334_v42, %v223_v25  ;;  %v217_v47 = vmul.f32 %v332_v19, %v216_v43 }
 0x154   :  { %v225_v48 = vmul.f32 0.5, %v224_v26  ;;  %v221_v24 = vsel %vm220_vm3, %v332_v19, %v217_v47 }
 0x155   :  { %v232_v49 = vmul.f32 %v221_v24, %v208_v46 }
 0x156   :  { %v226_v50 = vsub.f32 1.5, %v225_v48 }
 0x157   :  { %236 = vperm.xlu2 %328, %v232_v49  }
 0x158   :  { %v227_v52 = vmul.f32 %v334_v42, %v226_v50 }
 0x15a   :  { %v231_v30 = vsel %vm230_vm6, %v334_v42, %v227_v52  ;;  %v265_v56 = vpop.permute.xlu1 %264 }
 0x15b   :  { %v233_v53 = vmul.f32 %v231_v30, %v209_v51 }
 0x15d   :  { %241 = vperm.xlu0 %329, %v233_v53  }
 0x15f   :  { %269 = vperm.xlu2 %328, %v261_v54  }
 0x1b1   :  { %v237_v55 = vpop.permute.xlu2 %236 }
 0x1b2   :  { %v244_v57 = vmul.f32 %v237_v55, %v486_v62  ;;  %v246_v58 = vmul.f32 %v237_v55, %v483_v61  ;;  %v248_v59 = vmul.f32 %v237_v55, %v511_v7  ;;  %v250_v60 = vmul.f32 %v237_v55, %v519_v27 }
 0x1b3   :  { %v252_v63 = vmul.f32 %v237_v55, %v516_v23  ;;  %v254_v3 = vmul.f32 %v237_v55, %v547_v38  ;;  %v256_v4 = vmul.f32 %v237_v55, %v555_v40  ;;  %v258_v11 = vmul.f32 %v237_v55, %v552_v39 }
 0x1b4   :  { %v272_v5 = vadd.f32 %v265_v56, %v244_v57  ;;  %v274_v9 = vadd.f32 %v265_v56, %v246_v58  ;;  %v276_v10 = vadd.f32 %v265_v56, %v248_v59  ;;  %v278_v16 = vadd.f32 %v265_v56, %v250_v60 }
 0x1b5   :  { %v280_v17 = vadd.f32 %v265_v56, %v252_v63  ;;  %v282_v61 = vadd.f32 %v265_v56, %v254_v3  ;;  %v284_v62 = vadd.f32 %v265_v56, %v256_v4  ;;  %v286_v7 = vadd.f32 %v265_v56, %v258_v11 }
 0x1b6   :  { %288 = vst.msk [vmem:[#allocation5] sm:$0xff] %vm47_vm0, %v272_v5 }
 0x1b7   :  { %290 = vst.msk [vmem:[#allocation5 + $0x10] sm:$0xff] %vm47_vm0, %v274_v9 }
 0x1b8   :  { %292 = vst.msk [vmem:[#allocation5 + $0x20] sm:$0xff] %vm47_vm0, %v276_v10 }
 0x1b9   :  { %294 = vst.msk [vmem:[#allocation5 + $0x30] sm:$0xff] %vm47_vm0, %v278_v16  ;;  %v270_v21 = vpop.permute.xlu2 %269 }
 0x1ba   :  { %296 = vst.msk [vmem:[#allocation5 + $0x40] sm:$0xff] %vm47_vm0, %v280_v17 }
 0x1bb   :  { %298 = vst.msk [vmem:[#allocation5 + $0x50] sm:$0xff] %vm47_vm0, %v282_v61 }
 0x1bc   :  { %300 = vst.msk [vmem:[#allocation5 + $0x60] sm:$0xff] %vm47_vm0, %v284_v62 }
 0x1bd   :  { %302 = vst.msk [vmem:[#allocation5 + $0x70] sm:$0xff] %vm47_vm0, %v286_v7 }
 0x1cf   :  { %v242_v23 = vpop.permute.xlu0 %241 }
 0x1d0   :  { %v245_v27 = vmul.f32 %v242_v23, %v495_v0  ;;  %v247_v38 = vmul.f32 %v242_v23, %v501_v15  ;;  %v249_v39 = vmul.f32 %v242_v23, %v498_v1  ;;  %v251_v40 = vmul.f32 %v242_v23, %v529_v32 }
 0x1d1   :  { %v253_v22 = vmul.f32 %v242_v23, %v537_v34  ;;  %v255_v8 = vmul.f32 %v242_v23, %v534_v33  ;;  %v257_v6 = vmul.f32 %v242_v23, %v565_v44  ;;  %v259_v31 = vmul.f32 %v242_v23, %v570_v45 }
 0x1d2   :  { %v273_v28 = vadd.f32 %v270_v21, %v245_v27  ;;  %v275_v2 = vadd.f32 %v270_v21, %v247_v38  ;;  %v277_v29 = vadd.f32 %v270_v21, %v249_v39  ;;  %v279_v13 = vadd.f32 %v270_v21, %v251_v40 }
 0x1d3   :  { %v281_v0 = vadd.f32 %v270_v21, %v253_v22  ;;  %v283_v15 = vadd.f32 %v270_v21, %v255_v8  ;;  %v285_v1 = vadd.f32 %v270_v21, %v257_v6  ;;  %v287_v32 = vadd.f32 %v270_v21, %v259_v31 }
 0x1d4   :  { %289 = vst.msk [vmem:[#allocation5 + $0x8] sm:$0xff] %vm47_vm0, %v273_v28 }
 0x1d5   :  { %291 = vst.msk [vmem:[#allocation5 + $0x18] sm:$0xff] %vm47_vm0, %v275_v2 }
 0x1d6   :  { %293 = vst.msk [vmem:[#allocation5 + $0x28] sm:$0xff] %vm47_vm0, %v277_v29 }
 0x1d7   :  { %295 = vst.msk [vmem:[#allocation5 + $0x38] sm:$0xff] %vm47_vm0, %v279_v13 }
 0x1d8   :  { %297 = vst.msk [vmem:[#allocation5 + $0x48] sm:$0xff] %vm47_vm0, %v281_v0 }
 0x1d9   :  { %299 = vst.msk [vmem:[#allocation5 + $0x58] sm:$0xff] %vm47_vm0, %v283_v15 }
 0x1da   :  { %301 = vst.msk [vmem:[#allocation5 + $0x68] sm:$0xff] %vm47_vm0, %v285_v1 }
 0x1db   :  { %303 = vst.msk [vmem:[#allocation5 + $0x78] sm:$0xff] %vm47_vm0, %v287_v32 }
 0x1dc   :  { %316 = dma.vmem_to_hbm [thread:$0]  %s309_s2, 2048, %s311_s28, [#allocation4], %s388_s17, %s388_s17, %s389_s18  }
 0x1dd   :  { %385 = dma.done.wait [#allocation4], 2048  }
 0x1de   :  { %386 = vsyncadd [#allocation4], 4294965248 }
 0x1df   :  { %321 = vsyncpa [#allocation3], 1 }
 0x1e0   :  { %322 = vsyncpa [#allocation4], 1 }

</bundles_post_ra>
